<compile_context>
chip_gen: v5e
topology: v5e:2x2
jax: 0.10.0
libtpu: 0.0.40
codegen_flags: <defaults>
</compile_context>

<pallas_src>
import math

import jax
import jax.numpy as jnp
from jax.experimental import pallas as pl
from jax.experimental.pallas import tpu as pltpu


# --------------------------------------------------------------------------
# Main kernel: MLP -> fused single-step LSTM cell, tiled over the L axis.
# --------------------------------------------------------------------------
def memory_prompt_kernel(x_ref, w1_ref, b1_ref, w2_ref, b2_ref,
                         wg_ref, bg_ref, h0_ref, c0_ref,
                         h1_ref, c1_ref):
    # ---- MLP: Linear -> ReLU -> Linear (bf16 weights, f32 accumulate) ----
    # Recomputed per L-tile; all its operands are resident blocks (constant
    # index_map) so there is no extra HBM traffic, only negligible VPU/MXU work
    # at B_pad = 8.
    x = x_ref[...].astype(jnp.bfloat16)
    z1 = jnp.dot(x, w1_ref[...], preferred_element_type=jnp.float32) + b1_ref[...]
    a1 = jnp.maximum(z1, 0.0).astype(jnp.bfloat16)
    mlp_out = jnp.dot(a1, w2_ref[...], preferred_element_type=jnp.float32) + b2_ref[...]

    # ---- fused LSTM gate matmul: [mlp_out, h_{t-1}] @ W_cat  (gate order i,f,g,o) ----
    xh = jnp.concatenate([mlp_out.astype(jnp.bfloat16),
                          h0_ref[...].astype(jnp.bfloat16)], axis=1)   # (B_pad, K)

    def gate_pre(g):
        # wg_ref[g]: (K, TL) bf16 column tile;  bg_ref[g]: (1, TL) f32 fused bias.
        return jnp.dot(xh, wg_ref[g], preferred_element_type=jnp.float32) + bg_ref[g]

    i_g = jax.nn.sigmoid(gate_pre(0))
    f_g = jax.nn.sigmoid(gate_pre(1))
    g_g = jnp.tanh(gate_pre(2))
    o_g = jax.nn.sigmoid(gate_pre(3))

    c1 = f_g * c0_ref[...] + i_g * g_g
    h1_ref[...] = o_g * jnp.tanh(c1)
    c1_ref[...] = c1


# --------------------------------------------------------------------------
# torch.nan_to_num as a small tiled elementwise kernel (dtype-dependent limits).
# --------------------------------------------------------------------------
def nan_to_num_kernel(x_ref, o_ref):
    x = x_ref[...]
    finfo = jnp.finfo(x.dtype)
    x = jnp.where(jnp.isnan(x), jnp.zeros_like(x), x)
    o_ref[...] = jnp.clip(x, finfo.min, finfo.max)


def nan_to_num_pallas(x, *, tile_v=None):
    B, V = x.shape
    if tile_v is None:
        tile_v = next((t for t in (2048, 1024, 512, 256, 128) if V % t == 0), V)
    if V % tile_v != 0:
        tile_v = V
    n = pl.cdiv(V, tile_v)
    return pl.pallas_call(
        nan_to_num_kernel,
        out_shape=jax.ShapeDtypeStruct((B, V), x.dtype),
        grid=(n,),
        in_specs=[pl.BlockSpec((B, tile_v), lambda j: (0, j))],
        out_specs=pl.BlockSpec((B, tile_v), lambda j: (0, j)),
        compiler_params=pltpu.CompilerParams(dimension_semantics=("parallel",)),
    )(x)


# --------------------------------------------------------------------------
# Wrapper
# --------------------------------------------------------------------------
def _nbytes(shape, dtype):
    return math.prod(shape) * jnp.dtype(dtype).itemsize


def memory_prompt_forward(last_hidden, logits_gathered, params, hidden_state,
                          cell_state, num_prompt_tokens, embedding_dim,
                          *, tile_l=None):
    """Pallas-backed equivalent of the MemoryPrompt memory-module update."""
    B, E = last_hidden.shape
    L = hidden_state.shape[-1]                  # num_prompt_tokens * embedding_dim
    H = params['w1T'].shape[1]                  # mlp_hidden_size
    O = params['w2T'].shape[1]                  # mlp_output_size
    K = O + L                                   # fused gate-matmul reduction dim

    # Pad batch to a full sublane group (>= 8 rows).
    B_pad = max(8, ((B + 7) // 8) * 8)

    def pad_rows(a):
        return jnp.zeros((B_pad,) + a.shape[1:], a.dtype).at[:B].set(a)

    x_pad = pad_rows(last_hidden.astype(jnp.float32))
    h0_pad = pad_rows(hidden_state.reshape(B, L).astype(jnp.float32))
    c0_pad = pad_rows(cell_state.reshape(B, L).astype(jnp.float32))

    # Tile size over the LSTM hidden (L) axis.
    if tile_l is None:
        tile_l = next((t for t in (2048, 1024, 512, 256, 128) if L % t == 0), L)
    assert L % tile_l == 0, "tile_l must divide L"
    n_tiles = L // tile_l

    # Explicit VMEM budget derived from the chosen blocks (+ headroom), kept
    # below every generation's safe scoped limit.
    resident = (_nbytes((B_pad, E), jnp.float32)
                + _nbytes((E, H), jnp.bfloat16) + _nbytes((1, H), jnp.float32)
                + _nbytes((H, O), jnp.bfloat16) + _nbytes((1, O), jnp.float32)
                + _nbytes((B_pad, L), jnp.float32))
    per_tile = (_nbytes((4, K, tile_l), jnp.bfloat16)
                + _nbytes((4, 1, tile_l), jnp.float32)
                + 3 * _nbytes((B_pad, tile_l), jnp.float32))
    vmem_limit = min(2 * (resident + 2 * per_tile) + 8 * 1024 * 1024,
                     48 * 1024 * 1024)

    h1_pad, c1_pad = pl.pallas_call(
        memory_prompt_kernel,
        out_shape=(jax.ShapeDtypeStruct((B_pad, L), jnp.float32),
                   jax.ShapeDtypeStruct((B_pad, L), jnp.float32)),
        grid=(n_tiles,),
        in_specs=[
            pl.BlockSpec((B_pad, E), lambda j: (0, 0)),        # last_hidden (resident)
            pl.BlockSpec((E, H), lambda j: (0, 0)),            # w1T  bf16   (resident)
            pl.BlockSpec((1, H), lambda j: (0, 0)),            # b1          (resident)
            pl.BlockSpec((H, O), lambda j: (0, 0)),            # w2T  bf16   (resident)
            pl.BlockSpec((1, O), lambda j: (0, 0)),            # b2          (resident)
            pl.BlockSpec((4, K, tile_l), lambda j: (0, 0, j)), # fused gate weights (streamed)
            pl.BlockSpec((4, 1, tile_l), lambda j: (0, 0, j)), # fused gate bias    (streamed)
            pl.BlockSpec((B_pad, L), lambda j: (0, 0)),        # h0 (full, resident)
            pl.BlockSpec((B_pad, tile_l), lambda j: (0, j)),   # c0 tile
        ],
        out_specs=(pl.BlockSpec((B_pad, tile_l), lambda j: (0, j)),   # h1 tile
                   pl.BlockSpec((B_pad, tile_l), lambda j: (0, j))),  # c1 tile
        input_output_aliases={8: 1},   # c0 buffer reused for c1 (disjoint tiles)
        compiler_params=pltpu.CompilerParams(
            dimension_semantics=("parallel",),
            vmem_limit_bytes=int(vmem_limit)),
    )(x_pad, params['w1T'], params['b1'], params['w2T'], params['b2'],
      params['w_gates'], params['b_gates'], h0_pad, c0_pad)

    next_soft_prompt = h1_pad[:B].reshape(B, num_prompt_tokens, embedding_dim)
    next_hidden_state = h1_pad[:B].reshape(1, B, L)
    next_cell_state = c1_pad[:B].reshape(1, B, L)
    logits_out = nan_to_num_pallas(logits_gathered)
    return next_soft_prompt, next_hidden_state, next_cell_state, logits_out


# --------------------------------------------------------------------------
# Parameter init (matches the PyTorch module's _init_weights + LSTM defaults)
# --------------------------------------------------------------------------
def xavier_uniform(key, shape, gain):
    fan_out, fan_in = shape
    limit = gain * math.sqrt(6.0 / (fan_in + fan_out))
    return jax.random.uniform(key, shape, jnp.float32, -limit, limit)


def init_params(key, embedding_dim, mlp_hidden, mlp_out, num_prompt_tokens):
    L = num_prompt_tokens * embedding_dim
    K = mlp_out + L
    ks = jax.random.split(key, 6)
    # MLP linears: xavier_uniform(gain=1e-4), bias = 0 (as in _init_weights).
    w1 = xavier_uniform(ks[0], (mlp_hidden, embedding_dim), 1e-4)
    w2 = xavier_uniform(ks[1], (mlp_out, mlp_hidden), 1e-4)
    # LSTM keeps PyTorch default init: U(-1/sqrt(L), 1/sqrt(L)).
    k = 1.0 / math.sqrt(L)
    w_ih = jax.random.uniform(ks[2], (4 * L, mlp_out), jnp.float32, -k, k)
    w_hh = jax.random.uniform(ks[3], (4 * L, L), jnp.float32, -k, k)
    b_ih = jax.random.uniform(ks[4], (4 * L,), jnp.float32, -k, k)
    b_hh = jax.random.uniform(ks[5], (4 * L,), jnp.float32, -k, k)

    # Fuse the two gate matmuls: concat along input features [x | h], then
    # re-lay out as (gate, K, L) so per-L-tile column slices cover all 4 gates
    # with lane-aligned blocks.  w_gates[g, :, l] == concat(w_ih,w_hh)[g*L+l, :].
    w_cat = jnp.concatenate([w_ih, w_hh], axis=1)          # (4L, K)
    w_gates = w_cat.reshape(4, L, K).transpose(0, 2, 1)     # (4, K, L)
    b_gates = (b_ih + b_hh).reshape(4, 1, L)                 # fused bias

    return {
        'w1T': w1.T.astype(jnp.bfloat16),
        'b1': jnp.zeros((1, mlp_hidden), jnp.float32),
        'w2T': w2.T.astype(jnp.bfloat16),
        'b2': jnp.zeros((1, mlp_out), jnp.float32),
        'w_gates': w_gates.astype(jnp.bfloat16),
        'b_gates': b_gates.astype(jnp.float32),
    }


# --------------------------------------------------------------------------
# Plain-JAX reference (mirrors kernel numerics: bf16 weights, f32 accumulate)
# --------------------------------------------------------------------------
def reference_forward(last_hidden, logits_gathered, params, h0, c0, P, E):
    B = last_hidden.shape[0]
    L = h0.shape[-1]
    x = last_hidden.astype(jnp.bfloat16)
    z1 = jnp.dot(x, params['w1T'], preferred_element_type=jnp.float32) + params['b1']
    a1 = jnp.maximum(z1, 0.0).astype(jnp.bfloat16)
    mlp_out = jnp.dot(a1, params['w2T'], preferred_element_type=jnp.float32) + params['b2']
    xh = jnp.concatenate([mlp_out.astype(jnp.bfloat16),
                          h0.reshape(B, L).astype(jnp.bfloat16)], axis=1)
    pre = [jnp.dot(xh, params['w_gates'][g], preferred_element_type=jnp.float32)
           + params['b_gates'][g] for g in range(4)]
    i_g = jax.nn.sigmoid(pre[0])
    f_g = jax.nn.sigmoid(pre[1])
    g_g = jnp.tanh(pre[2])
    o_g = jax.nn.sigmoid(pre[3])
    c1 = f_g * c0.reshape(B, L) + i_g * g_g
    h1 = o_g * jnp.tanh(c1)
    return (h1.reshape(B, P, E), h1.reshape(1, B, L), c1.reshape(1, B, L),
            jnp.nan_to_num(logits_gathered))


if __name__ == "__main__":
    # Small, MemoryPrompt-consistent, lane-aligned sizes.
    B, S, V = 2, 8, 512            # batch, seq len, vocab size
    E = 32                         # embedding_dim of the base model
    MLP_HIDDEN, MLP_OUT = 128, 128 # mlp_hidden_size, mlp_output_size (128-lane padded)
    P = 8                          # num_prompt_tokens
    L = P * E                      # LSTM hidden size (256 -> 2 L-tiles of 128)

    key = jax.random.PRNGKey(0)
    k_par, k_hs, k_lg = jax.random.split(key, 3)
    params = init_params(k_par, E, MLP_HIDDEN, MLP_OUT, P)

    # Synthetic "base model" outputs (the wrapped LM is external to this module).
    hidden_states_last = jax.random.normal(k_hs, (B, S, E), jnp.float32)
    logits = jax.random.normal(k_lg, (B, S, V), jnp.float32)
    # Inject NaN / inf so nan_to_num is exercised.
    logits = logits.at[0, S - 1, 0].set(jnp.nan).at[1, 4, 1].set(jnp.inf)

    # attention mask -> input lengths (lengths-1 indexing, as in the module)
    attention_mask = jnp.array([[1] * 8, [1] * 5 + [0] * 3], jnp.int32)
    input_lengths = attention_mask.sum(axis=1).astype(jnp.int32)
    rows = jnp.arange(B)
    last_hidden = hidden_states_last[rows, input_lengths - 1]       # (B, E)
    logits_gathered = logits[rows, input_lengths - 1]               # (B, V)

    # hidden_state is None branch -> zeros of shape (1, B, P*E)
    h0 = jnp.zeros((1, B, L), jnp.float32)
    c0 = jnp.zeros((1, B, L), jnp.float32)

    # ---- step 1 (zero recurrent state) ----
    out = memory_prompt_forward(last_hidden, logits_gathered, params,
                                h0, c0, P, E, tile_l=128)
    out = jax.block_until_ready(out)
    ref = reference_forward(last_hidden, logits_gathered, params, h0, c0, P, E)
    for got, want in zip(out, ref):
        assert got.shape == want.shape
        assert jnp.allclose(got, want, atol=1e-5, rtol=1e-4)

    next_soft_prompt, next_h, next_c, logits_out = out
    assert next_soft_prompt.shape == (B, P, E)
    assert next_h.shape == (1, B, L) and next_c.shape == (1, B, L)
    assert logits_out.shape == (B, V)
    assert jnp.isfinite(logits_out).all()

    # ---- step 2 (feed recurrent state back, exercises nonzero h0/c0) ----
    out2 = memory_prompt_forward(last_hidden, logits_gathered, params,
                                 next_h, next_c, P, E, tile_l=128)
    out2 = jax.block_until_ready(out2)
    ref2 = reference_forward(last_hidden, logits_gathered, params,
                             next_h, next_c, P, E)
    for got, want in zip(out2, ref2):
        assert got.shape == want.shape
        assert jnp.allclose(got, want, atol=1e-5, rtol=1e-4)

    # TODO(synk): the wrapped HF base model forward (logits / hidden states /
    # loss) has no Pallas equivalent here; its outputs are synthetic inputs.
    print("KERNEL_OK")
</pallas_src>

<mosaic_0001>
module attributes {stable_mosaic.version = 11 : i64} {
  func.func @memory_prompt_kernel(%arg0: i32, %arg1: memref<8x32xf32, #tpu.memory_space<vmem>>, %arg2: memref<32x128xbf16, #tpu.memory_space<vmem>>, %arg3: memref<1x128xf32, #tpu.memory_space<vmem>>, %arg4: memref<128x128xbf16, #tpu.memory_space<vmem>>, %arg5: memref<1x128xf32, #tpu.memory_space<vmem>>, %arg6: memref<4x384x128xbf16, #tpu.memory_space<vmem>>, %arg7: memref<4x1x128xf32, #tpu.memory_space<vmem>>, %arg8: memref<8x256xf32, #tpu.memory_space<vmem>>, %arg9: memref<8x128xf32, #tpu.memory_space<vmem>>, %arg10: memref<8x128xf32, #tpu.memory_space<vmem>>, %arg11: memref<8x128xf32, #tpu.memory_space<vmem>>) attributes {dimension_semantics = [#tpu.dimension_semantics<parallel>], iteration_bounds = array<i64: 2>, scalar_prefetch = 0 : i64, scratch_operands = 0 : i64, tpu.core_type = #tpu.core_type<tc>, window_params = [{pipeline_mode = #tpu.pipeline_mode<synchronous>, transform_indices = @transform_0, window_bounds = array<i64: 8, 32>}, {pipeline_mode = #tpu.pipeline_mode<synchronous>, transform_indices = @transform_1, window_bounds = array<i64: 32, 128>}, {pipeline_mode = #tpu.pipeline_mode<synchronous>, transform_indices = @transform_2, window_bounds = array<i64: 1, 128>}, {pipeline_mode = #tpu.pipeline_mode<synchronous>, transform_indices = @transform_3, window_bounds = array<i64: 128, 128>}, {pipeline_mode = #tpu.pipeline_mode<synchronous>, transform_indices = @transform_4, window_bounds = array<i64: 1, 128>}, {transform_indices = @transform_5, window_bounds = array<i64: 4, 384, 128>}, {transform_indices = @transform_6, window_bounds = array<i64: 4, 1, 128>}, {pipeline_mode = #tpu.pipeline_mode<synchronous>, transform_indices = @transform_7, window_bounds = array<i64: 8, 256>}, {transform_indices = @transform_8, window_bounds = array<i64: 8, 128>}, {transform_indices = @transform_9, window_bounds = array<i64: 8, 128>}, {transform_indices = @transform_10, window_bounds = array<i64: 8, 128>}]} {
    %c0 = arith.constant 0 : index
    %c0_0 = arith.constant 0 : index
    %0 = vector.load %arg1[%c0, %c0_0] : memref<8x32xf32, #tpu.memory_space<vmem>>, vector<8x32xf32>
    %1 = arith.truncf %0 : vector<8x32xf32> to vector<8x32xbf16>
    %c0_1 = arith.constant 0 : index
    %c0_2 = arith.constant 0 : index
    %2 = vector.load %arg2[%c0_1, %c0_2] : memref<32x128xbf16, #tpu.memory_space<vmem>>, vector<32x128xbf16>
    %cst = arith.constant dense<0.000000e+00> : vector<8x128xf32>
    %3 = tpu.matmul %1, %2, %cst {dimension_numbers = #tpu.dot_dimension_numbers<[1], [0], [0], [1], [0, 0, 1, 1], [], []>} : vector<8x32xbf16>, vector<32x128xbf16>, vector<8x128xf32> -> vector<8x128xf32>
    %c0_3 = arith.constant 0 : index
    %c0_4 = arith.constant 0 : index
    %4 = vector.load %arg3[%c0_3, %c0_4] : memref<1x128xf32, #tpu.memory_space<vmem>>, vector<1x128xf32>
    %5 = vector.broadcast %4 : vector<1x128xf32> to vector<8x128xf32>
    %6 = arith.addf %3, %5 : vector<8x128xf32>
    %cst_5 = arith.constant 0.000000e+00 : f32
    %7 = vector.broadcast %cst_5 : f32 to vector<8x128xf32>
    %8 = arith.maximumf %6, %7 : vector<8x128xf32>
    %9 = arith.truncf %8 : vector<8x128xf32> to vector<8x128xbf16>
    %c0_6 = arith.constant 0 : index
    %c0_7 = arith.constant 0 : index
    %10 = vector.load %arg4[%c0_6, %c0_7] : memref<128x128xbf16, #tpu.memory_space<vmem>>, vector<128x128xbf16>
    %cst_8 = arith.constant dense<0.000000e+00> : vector<8x128xf32>
    %11 = tpu.matmul %9, %10, %cst_8 {dimension_numbers = #tpu.dot_dimension_numbers<[1], [0], [0], [1], [0, 0, 1, 1], [], []>} : vector<8x128xbf16>, vector<128x128xbf16>, vector<8x128xf32> -> vector<8x128xf32>
    %c0_9 = arith.constant 0 : index
    %c0_10 = arith.constant 0 : index
    %12 = vector.load %arg5[%c0_9, %c0_10] : memref<1x128xf32, #tpu.memory_space<vmem>>, vector<1x128xf32>
    %13 = vector.broadcast %12 : vector<1x128xf32> to vector<8x128xf32>
    %14 = arith.addf %11, %13 : vector<8x128xf32>
    %15 = arith.truncf %14 : vector<8x128xf32> to vector<8x128xbf16>
    %c0_11 = arith.constant 0 : index
    %c0_12 = arith.constant 0 : index
    %16 = vector.load %arg8[%c0_11, %c0_12] : memref<8x256xf32, #tpu.memory_space<vmem>>, vector<8x256xf32>
    %17 = arith.truncf %16 : vector<8x256xf32> to vector<8x256xbf16>
    %18 = tpu.concatenate %15, %17 in 1 : vector<8x128xbf16>, vector<8x256xbf16> -> vector<8x384xbf16>
    %c0_13 = arith.constant 0 : index
    %c0_14 = arith.constant 0 : index
    %c0_15 = arith.constant 0 : index
    %19 = vector.load %arg6[%c0_13, %c0_14, %c0_15] : memref<4x384x128xbf16, #tpu.memory_space<vmem>>, vector<1x384x128xbf16>
    %20 = vector.shape_cast %19 : vector<1x384x128xbf16> to vector<384x128xbf16>
    %cst_16 = arith.constant dense<0.000000e+00> : vector<8x128xf32>
    %21 = tpu.matmul %18, %20, %cst_16 {dimension_numbers = #tpu.dot_dimension_numbers<[1], [0], [0], [1], [0, 0, 1, 1], [], []>} : vector<8x384xbf16>, vector<384x128xbf16>, vector<8x128xf32> -> vector<8x128xf32>
    %c0_17 = arith.constant 0 : index
    %c0_18 = arith.constant 0 : index
    %c0_19 = arith.constant 0 : index
    %22 = vector.load %arg7[%c0_17, %c0_18, %c0_19] : memref<4x1x128xf32, #tpu.memory_space<vmem>>, vector<1x1x128xf32>
    %23 = vector.shape_cast %22 : vector<1x1x128xf32> to vector<1x128xf32>
    %24 = vector.broadcast %23 : vector<1x128xf32> to vector<8x128xf32>
    %25 = arith.addf %21, %24 : vector<8x128xf32>
    %26 = arith.negf %25 : vector<8x128xf32>
    %27 = math.exp %26 : vector<8x128xf32>
    %cst_20 = arith.constant 1.000000e+00 : f32
    %28 = vector.broadcast %cst_20 : f32 to vector<8x128xf32>
    %29 = arith.addf %28, %27 : vector<8x128xf32>
    %30 = arith.divf %28, %29 : vector<8x128xf32>
    %c1 = arith.constant 1 : index
    %c0_21 = arith.constant 0 : index
    %c0_22 = arith.constant 0 : index
    %31 = vector.load %arg6[%c1, %c0_21, %c0_22] : memref<4x384x128xbf16, #tpu.memory_space<vmem>>, vector<1x384x128xbf16>
    %32 = vector.shape_cast %31 : vector<1x384x128xbf16> to vector<384x128xbf16>
    %cst_23 = arith.constant dense<0.000000e+00> : vector<8x128xf32>
    %33 = tpu.matmul %18, %32, %cst_23 {dimension_numbers = #tpu.dot_dimension_numbers<[1], [0], [0], [1], [0, 0, 1, 1], [], []>} : vector<8x384xbf16>, vector<384x128xbf16>, vector<8x128xf32> -> vector<8x128xf32>
    %c1_24 = arith.constant 1 : index
    %c0_25 = arith.constant 0 : index
    %c0_26 = arith.constant 0 : index
    %34 = vector.load %arg7[%c1_24, %c0_25, %c0_26] : memref<4x1x128xf32, #tpu.memory_space<vmem>>, vector<1x1x128xf32>
    %35 = vector.shape_cast %34 : vector<1x1x128xf32> to vector<1x128xf32>
    %36 = vector.broadcast %35 : vector<1x128xf32> to vector<8x128xf32>
    %37 = arith.addf %33, %36 : vector<8x128xf32>
    %38 = arith.negf %37 : vector<8x128xf32>
    %39 = math.exp %38 : vector<8x128xf32>
    %cst_27 = arith.constant 1.000000e+00 : f32
    %40 = vector.broadcast %cst_27 : f32 to vector<8x128xf32>
    %41 = arith.addf %40, %39 : vector<8x128xf32>
    %42 = arith.divf %40, %41 : vector<8x128xf32>
    %c2 = arith.constant 2 : index
    %c0_28 = arith.constant 0 : index
    %c0_29 = arith.constant 0 : index
    %43 = vector.load %arg6[%c2, %c0_28, %c0_29] : memref<4x384x128xbf16, #tpu.memory_space<vmem>>, vector<1x384x128xbf16>
    %44 = vector.shape_cast %43 : vector<1x384x128xbf16> to vector<384x128xbf16>
    %cst_30 = arith.constant dense<0.000000e+00> : vector<8x128xf32>
    %45 = tpu.matmul %18, %44, %cst_30 {dimension_numbers = #tpu.dot_dimension_numbers<[1], [0], [0], [1], [0, 0, 1, 1], [], []>} : vector<8x384xbf16>, vector<384x128xbf16>, vector<8x128xf32> -> vector<8x128xf32>
    %c2_31 = arith.constant 2 : index
    %c0_32 = arith.constant 0 : index
    %c0_33 = arith.constant 0 : index
    %46 = vector.load %arg7[%c2_31, %c0_32, %c0_33] : memref<4x1x128xf32, #tpu.memory_space<vmem>>, vector<1x1x128xf32>
    %47 = vector.shape_cast %46 : vector<1x1x128xf32> to vector<1x128xf32>
    %48 = vector.broadcast %47 : vector<1x128xf32> to vector<8x128xf32>
    %49 = arith.addf %45, %48 : vector<8x128xf32>
    %50 = math.tanh %49 : vector<8x128xf32>
    %c3 = arith.constant 3 : index
    %c0_34 = arith.constant 0 : index
    %c0_35 = arith.constant 0 : index
    %51 = vector.load %arg6[%c3, %c0_34, %c0_35] : memref<4x384x128xbf16, #tpu.memory_space<vmem>>, vector<1x384x128xbf16>
    %52 = vector.shape_cast %51 : vector<1x384x128xbf16> to vector<384x128xbf16>
    %cst_36 = arith.constant dense<0.000000e+00> : vector<8x128xf32>
    %53 = tpu.matmul %18, %52, %cst_36 {dimension_numbers = #tpu.dot_dimension_numbers<[1], [0], [0], [1], [0, 0, 1, 1], [], []>} : vector<8x384xbf16>, vector<384x128xbf16>, vector<8x128xf32> -> vector<8x128xf32>
    %c3_37 = arith.constant 3 : index
    %c0_38 = arith.constant 0 : index
    %c0_39 = arith.constant 0 : index
    %54 = vector.load %arg7[%c3_37, %c0_38, %c0_39] : memref<4x1x128xf32, #tpu.memory_space<vmem>>, vector<1x1x128xf32>
    %55 = vector.shape_cast %54 : vector<1x1x128xf32> to vector<1x128xf32>
    %56 = vector.broadcast %55 : vector<1x128xf32> to vector<8x128xf32>
    %57 = arith.addf %53, %56 : vector<8x128xf32>
    %58 = arith.negf %57 : vector<8x128xf32>
    %59 = math.exp %58 : vector<8x128xf32>
    %cst_40 = arith.constant 1.000000e+00 : f32
    %60 = vector.broadcast %cst_40 : f32 to vector<8x128xf32>
    %61 = arith.addf %60, %59 : vector<8x128xf32>
    %62 = arith.divf %60, %61 : vector<8x128xf32>
    %c0_41 = arith.constant 0 : index
    %c0_42 = arith.constant 0 : index
    %63 = vector.load %arg9[%c0_41, %c0_42] : memref<8x128xf32, #tpu.memory_space<vmem>>, vector<8x128xf32>
    %64 = arith.mulf %42, %63 : vector<8x128xf32>
    %65 = arith.mulf %30, %50 : vector<8x128xf32>
    %66 = arith.addf %64, %65 : vector<8x128xf32>
    %67 = math.tanh %66 : vector<8x128xf32>
    %68 = arith.mulf %62, %67 : vector<8x128xf32>
    %c0_43 = arith.constant 0 : index
    %c0_44 = arith.constant 0 : index
    %69 = vector.load %arg10[%c0_43, %c0_44] : memref<8x128xf32, #tpu.memory_space<vmem>>, vector<8x128xf32>
    tpu.vector_store %arg10[%c0_43, %c0_44], %68 {strides = array<i32>} : memref<8x128xf32, #tpu.memory_space<vmem>>, vector<8x128xf32>,
    %c0_45 = arith.constant 0 : index
    %c0_46 = arith.constant 0 : index
    %70 = vector.load %arg11[%c0_45, %c0_46] : memref<8x128xf32, #tpu.memory_space<vmem>>, vector<8x128xf32>
    tpu.vector_store %arg11[%c0_45, %c0_46], %66 {strides = array<i32>} : memref<8x128xf32, #tpu.memory_space<vmem>>, vector<8x128xf32>,
    return
  }
  func.func @transform_0(%arg0: i32) -> (i32, i32) {
    %c0_i32 = arith.constant 0 : i32
    %c0_i32_0 = arith.constant 0 : i32
    %c0_i32_1 = arith.constant 0 : i32
    return %c0_i32, %c0_i32_0 : i32, i32
  }
  func.func @transform_1(%arg0: i32) -> (i32, i32) {
    %c0_i32 = arith.constant 0 : i32
    %c0_i32_0 = arith.constant 0 : i32
    %c0_i32_1 = arith.constant 0 : i32
    return %c0_i32, %c0_i32_0 : i32, i32
  }
  func.func @transform_2(%arg0: i32) -> (i32, i32) {
    %c0_i32 = arith.constant 0 : i32
    %c0_i32_0 = arith.constant 0 : i32
    %c0_i32_1 = arith.constant 0 : i32
    return %c0_i32, %c0_i32_0 : i32, i32
  }
  func.func @transform_3(%arg0: i32) -> (i32, i32) {
    %c0_i32 = arith.constant 0 : i32
    %c0_i32_0 = arith.constant 0 : i32
    %c0_i32_1 = arith.constant 0 : i32
    return %c0_i32, %c0_i32_0 : i32, i32
  }
  func.func @transform_4(%arg0: i32) -> (i32, i32) {
    %c0_i32 = arith.constant 0 : i32
    %c0_i32_0 = arith.constant 0 : i32
    %c0_i32_1 = arith.constant 0 : i32
    return %c0_i32, %c0_i32_0 : i32, i32
  }
  func.func @transform_5(%arg0: i32) -> (i32, i32, i32) {
    %c0_i32 = arith.constant 0 : i32
    %c0_i32_0 = arith.constant 0 : i32
    %c0_i32_1 = arith.constant 0 : i32
    return %c0_i32, %c0_i32_0, %arg0 : i32, i32, i32
  }
  func.func @transform_6(%arg0: i32) -> (i32, i32, i32) {
    %c0_i32 = arith.constant 0 : i32
    %c0_i32_0 = arith.constant 0 : i32
    %c0_i32_1 = arith.constant 0 : i32
    return %c0_i32, %c0_i32_0, %arg0 : i32, i32, i32
  }
  func.func @transform_7(%arg0: i32) -> (i32, i32) {
    %c0_i32 = arith.constant 0 : i32
    %c0_i32_0 = arith.constant 0 : i32
    %c0_i32_1 = arith.constant 0 : i32
    return %c0_i32, %c0_i32_0 : i32, i32
  }
  func.func @transform_8(%arg0: i32) -> (i32, i32) {
    %c0_i32 = arith.constant 0 : i32
    %c0_i32_0 = arith.constant 0 : i32
    return %c0_i32, %arg0 : i32, i32
  }
  func.func @transform_9(%arg0: i32) -> (i32, i32) {
    %c0_i32 = arith.constant 0 : i32
    %c0_i32_0 = arith.constant 0 : i32
    return %c0_i32, %arg0 : i32, i32
  }
  func.func @transform_10(%arg0: i32) -> (i32, i32) {
    %c0_i32 = arith.constant 0 : i32
    %c0_i32_0 = arith.constant 0 : i32
    return %c0_i32, %arg0 : i32, i32
  }
}

</mosaic_0001>

<bundles_post_ra>
// kernel: tpu_custom_call.1
= control target key start
LH: loop header
LB: loop body
LE: loop exit
PB: predicated region body
PF: predicated region fallthrough
CT: control target
= control target key end

     0   :  { %s3355_s0 = inlined_call_operand.hbm [shape: f32[8,32], index: 0, kind: input, shape index: {}]   ;;  %s3356_s1 = inlined_call_operand.vmem [shape: bf16[32,128], index: 1, kind: input, shape index: {}]   ;;  %s3357_s2 = inlined_call_operand.vmem [shape: f32[1,128], index: 2, kind: input, shape index: {}]   ;;  %s3358_s3 = inlined_call_operand.hbm [shape: bf16[128,128], index: 3, kind: input, shape index: {}]   ;;  %s3359_s4 = inlined_call_operand.vmem [shape: f32[1,128], index: 4, kind: input, shape index: {}]   ;;  %s3360_s5 = inlined_call_operand.hbm [shape: bf16[4,384,256], index: 5, kind: input, shape index: {}]   ;;  %s3361_s6 = inlined_call_operand.hbm [shape: f32[4,1,256], index: 6, kind: input, shape index: {}]   ;;  %s3362_s7 = inlined_call_operand.vmem [shape: f32[8,256], index: 7, kind: input, shape index: {}]   ;;  %s3363_s8 = inlined_call_operand.hbm [shape: f32[8,256], index: 8, kind: input, shape index: {}, may-alias: {8,10}]   ;;  %s3364_s9 = inlined_call_operand.hbm [shape: f32[8,256], index: 9, kind: output, shape index: {0}]   ;;  %s3365_s10 = inlined_call_operand.hbm [shape: f32[8,256], index: 10, kind: output, shape index: {1}, may-alias: {8,10}]  }
   0x1   :  { %3376 = sst [smem:[#allocation24_spill]] %s3355_s0 }
   0x2   :  { %3377 = sst [smem:[#allocation25_spill]] %s3360_s5 }
   0x3   :  { %3378 = sst [smem:[#allocation26_spill]] %s3361_s6 }
   0x4   :  { %3379 = sst [smem:[#allocation27_spill]] %s3364_s9 }
   0x5   :  { %3380 = sst [smem:[#allocation28_spill]] %s3365_s10 }
   0x6   :  { %16 = vsyncpa [#allocation3], 0 }
   0x7   :  { %17 = vsyncpa [#allocation6], 0 }
   0x8   :  { %18 = vsyncpa [#allocation4], 0 }
   0x9   :  { %20 = vsyncpa [#allocation4 + $0x1], 0 }
   0xa   :  { %21 = vsyncpa [#allocation12], 0 }
   0xb   :  { %23 = vsyncpa [#allocation12 + $0x1], 0  ;;  %s2970_s13 = smov 0   ;;  %s2972_s14 = smov 0  }
   0xc   :  { %s2974_s15 = smov 0   ;;  %s2976_s16 = smov 0  }
   0xd LB: > { %3381 = sst [smem:[#allocation18_spill]] %s2893_s13  ;;  %s2991_s17 = sadd.s32 4294967295, %s2905_s16   ;;  %s2905_s16 = sphi %s2976_s16, %s3409_s16   ;;  %s2901_s15 = sphi %s2974_s15, %s3411_s15   ;;  %s2897_s14 = sphi %s2972_s14, %s3413_s14   ;;  %s2893_s13 = sphi %s2970_s13, %s3412_s13  }
   0xe   : > { %3382 = sst [smem:[#allocation19_spill]] %s2901_s15  ;;  %s1834_s18 = sadd.s32 4294967294, %s2905_s16  }
   0xf   : > { %s2995_s19 = sadd.s32 1, %s2905_s16   ;;  %s141_s20 = sadd.s32 1, %s2901_s15 }
  0x10   : > { %3383 = sst [smem:[#allocation20_spill]] %s2995_s19  ;;  %s138_s21 = ssub.s32 %s2905_s16, %s2995_s19 }
  0x11   : > { %p148_p0 = scmp.ne.s32.totalorder %s2901_s15, %s2897_s14  ;;  %p139_p1 = scmp.eq.s32.totalorder %s138_s21, 0 }
  0x12   : > { %p149_p2 = scmp.eq.s32.totalorder %s2905_s16, 0  ;;  %p154_p3 = scmp.ne.s32.totalorder %s2897_s14, %s2893_s13 }
  0x13   : > { %p3372_p4 = scmp.eq.s32.totalorder %s2991_s17, 0  ;;  %p251_p7 = scmp.eq.s32.totalorder %s2991_s17, 1 }
  0x14   : > { %s3007_s22 = scalar_select %p139_p1, %s2901_s15, %s141_s20  }
  0x15   : > { %p3009_p5 = por %p149_p2, %p148_p0  ;;  %p3015_p6 = por %p3372_p4, %p154_p3 }
  0x16   : > { %3384 = sst [smem:[#allocation21_spill]] %s3007_s22  ;;  %p257_p8 = scmp.eq.s32.totalorder %s1834_s18, 1 }
  0x17   : > { %p1835_p9 = scmp.ge.s32.totalorder %s2905_s16, 1  ;;  %p290_p10 = scmp.lt.s32.totalorder %s2905_s16, 3 }
  0x18   : > { %p3022_p11 = por %p251_p7, %p148_p0  ;;  %p3026_p12 = por %p257_p8, %p154_p3 }
  0x19   : > { %p3030_p13 = pnand %p1835_p9, %p290_p10  ;;  %s3392_s0 = sld [smem:[#allocation24_spill]] }
  0x1a   : > { %s3387_s25 = scalar_select %p3022_p11, 1, 0 }
  0x1b   : > { %s3389_s26 = scalar_select %p3026_p12, 1, 0 }
  0x1c   : > { %3388 = sst [smem:[#allocation22_spill]] %s3387_s25  ;;  %p2557_p1 = pneg %p3030_p13 }
  0x1d   : > { %3390 = sst [smem:[#allocation23_spill]] %s3389_s26  ;;  %s2907_s11 = smov [#allocation2]  }
  0x1e   : > { %s304_s12 = sshll.u32 %s2907_s11, 4  ;;  %p3042_p2 = pnand %p2557_p1, %p3372_p4  ;;  %s305_s12 = int_to_ptr.vmem [resolvable:$true] %s304_s12 }
  0x1f   : > { %s302_s30 = sshll.u32 %s3392_s0, 4  ;;  %p2583_p3 = scmp.lt.s32.totalorder %s2905_s16, 2  ;;  %s303_s30 = int_to_ptr.hbm [resolvable:$true] %s302_s30 }
  0x20   : > { %2560 = dma.hbm_to_vmem [thread:$0]  (!%p3042_p2), %s303_s30, 128, %s305_s12, [#allocation3]  }
  0x21   : > { %p3051_p7 = pnand %p2583_p3, %p3009_p5  ;;  %s341_s21 = sand.u32 1, %s2905_s16  }
  0x22   : > { %s3057_s28 = sand.u32 1, %s2901_s15   ;;  %s1839_s11 = sshll.u32 %s2905_s16, 2 }
  0x23   : > { %s2537_s29 = smul.u32 768, %s3057_s28  ;;  %s3395_s5 = sld [smem:[#allocation25_spill]] }
  0x24   : > { %s3064_s23 = scalar_lea.sflag [#allocation3], %s341_s21  ;;  %p2683_p8 = pneg %p3051_p7 }
  0x25   : > { %s345_s13 = scalar_lea.vmem [#allocation7], %s2537_s29 }
  0x26   : > { %s352_s30 = sshll.u32 %s345_s13, 4  ;;  %s353_s30 = int_to_ptr.vmem [resolvable:$true] %s352_s30 }
  0x29   : > { %s349_s19 = scalar_lea.hbm %s3395_s5, %s1839_s11 }
  0x2a   : > { %s350_s26 = sshll.u32 %s349_s19, 4  ;;  %s2686_s19 = scalar_lea.hbm %s3395_s5, 1536  ;;  %s351_s26 = int_to_ptr.hbm [resolvable:$true] %s350_s26 }
  0x2b   : > { %s2679_s12 = sshra.s32 %s351_s26, 4  ;;  %s2680_s12 = int_to_ptr.hbm [resolvable:$true] %s2679_s12 }
  0x2c   : > { %s2681_s9 = scalar_lea.hbm %s2680_s12, 768  ;;  %p2687_p1 = scmp.lt.s32.totalorder %s2680_s12, %s3395_s5 }
  0x2d   : > { %p2682_p5 = scmp.ne.s32.totalorder %s2680_s12, %s2681_s9  ;;  %p2688_p3 = scmp.lt.s32.totalorder %s2686_s19, %s2681_s9 }
  0x2f   : > { %p2684_p9 = pnand %p2683_p8, %p2682_p5  ;;  %p2689_p0 = por %p2688_p3, %p2687_p1 }
  0x31   : > { %p2685_p10 = pneg %p2684_p9 }
  0x33   : > { %p2690_p4 = pnand %p2689_p0, %p2685_p10 }
  0x35   : > { %2693 = shalt.err (!%p2690_p4)
}
  0x36   : > { %s2908_s21 = smov 128   ;;  %s2909_s29 = smov 64  }
  0x37   : > { %s2910_s11 = smov 4   ;;  %s1840_s15 = sshll.u32 %s3057_s28, 2 }
  0x38   : > { %2567 = dma.hbm_to_vmem [thread:$0]  (!%p3051_p7), %s351_s26, 12288, %s353_s30, %s3064_s23, %s2908_s21, %s2909_s29, %s2910_s11  }
  0x39   : > { %s3396_s6 = sld [smem:[#allocation26_spill]]  ;;  %s366_s19 = scalar_lea.vmem [#allocation8], %s1840_s15 }
  0x3a   : > { %s372_s13 = sshll.u32 %s366_s19, 4  ;;  %s373_s13 = int_to_ptr.vmem [resolvable:$true] %s372_s13 }
  0x3f   : > { %s369_s9 = scalar_lea.hbm %s3396_s6, %s2905_s16  ;;  %s2716_s30 = scalar_lea.hbm %s3396_s6, 8 }
  0x40   : > { %s370_s12 = sshll.u32 %s369_s9, 4  ;;  %s371_s12 = int_to_ptr.hbm [resolvable:$true] %s370_s12 }
  0x41   : > { %s2709_s5 = sshra.s32 %s371_s12, 4  ;;  %s2710_s5 = int_to_ptr.hbm [resolvable:$true] %s2709_s5 }
  0x42   : > { %s2711_s25 = scalar_lea.hbm %s2710_s5, 4  ;;  %p2717_p9 = scmp.lt.s32.totalorder %s2710_s5, %s3396_s6 }
  0x43   : > { %p2712_p4 = scmp.ne.s32.totalorder %s2710_s5, %s2711_s25  ;;  %p2718_p10 = scmp.lt.s32.totalorder %s2716_s30, %s2711_s25 }
  0x45   : > { %p2714_p0 = pnand %p2712_p4, %p2683_p8  ;;  %p2719_p1 = por %p2718_p10, %p2717_p9 }
  0x47   : > { %p2715_p5 = pneg %p2714_p0 }
  0x49   : > { %p2720_p3 = pnand %p2719_p1, %p2715_p5 }
  0x4b   : > { %2723 = shalt.err (!%p2720_p3)
}
  0x4c   : > { %s2911_s15 = smov 32   ;;  %s2912_s22 = smov 16  }
  0x4d   : > { %s2913_s9 = smov 1   ;;  %s319_s26 = sshll.u32 %s3358_s3, 4  ;;  %s320_s26 = int_to_ptr.hbm [resolvable:$true] %s319_s26 }
  0x4e   : > { %2570 = dma.hbm_to_vmem [thread:$0]  (!%p3051_p7), %s371_s12, 64, %s373_s13, %s3064_s23, %s2911_s15, %s2912_s22, %s2913_s9  }
  0x4f   : > { %s2914_s5 = smov [#allocation5]   ;;  %s1841_s30 = sshll.u32 %s3057_s28, 3 }
  0x50   : > { %s321_s25 = sshll.u32 %s2914_s5, 4  ;;  %s1842_s21 = sshll.u32 %s2905_s16, 3  ;;  %s322_s25 = int_to_ptr.vmem [resolvable:$true] %s321_s25 }
  0x51   : > { %2563 = dma.hbm_to_vmem [thread:$0]  (!%p3042_p2), %s320_s26, 1024, %s322_s25, [#allocation6], %s2909_s29, %s2909_s29, %s2910_s11  }
  0x52   : > { %s390_s12 = scalar_lea.hbm %s3363_s8, %s1842_s21  ;;  %s386_s13 = scalar_lea.vmem [#allocation9], %s1841_s30 }
  0x53   : > { %s394_s15 = sshll.u32 %s386_s13, 4  ;;  %s392_s22 = sshll.u32 %s390_s12, 4  ;;  %s395_s15 = int_to_ptr.vmem [resolvable:$true] %s394_s15  ;;  %s393_s22 = int_to_ptr.hbm [resolvable:$true] %s392_s22 }
  0x54   : > { %s2769_s9 = sshra.s32 %s393_s22, 4  ;;  %s2776_s29 = scalar_lea.hbm %s3363_s8, 16  ;;  %s2770_s9 = int_to_ptr.hbm [resolvable:$true] %s2769_s9 }
  0x55   : > { %s2771_s10 = scalar_lea.hbm %s2770_s9, 8  ;;  %p2777_p2 = scmp.lt.s32.totalorder %s2770_s9, %s3363_s8 }
  0x56   : > { %p2772_p4 = scmp.ne.s32.totalorder %s2770_s9, %s2771_s10  ;;  %p2778_p9 = scmp.lt.s32.totalorder %s2776_s29, %s2771_s10 }
  0x58   : > { %p2774_p0 = pnand %p2772_p4, %p2683_p8  ;;  %p2779_p10 = por %p2778_p9, %p2777_p2 }
  0x5a   : > { %p2775_p5 = pneg %p2774_p0 }
  0x5c   : > { %p2780_p1 = pnand %p2779_p10, %p2775_p5 }
  0x5e   : > { %2783 = shalt.err (!%p2780_p1)
}
  0x5f   : > { %2573 = dma.hbm_to_vmem [thread:$0]  (!%p3051_p7), %s393_s22, 128, %s395_s15, %s3064_s23  }
  0x60   : > { %403 = sbr.rel (%p3030_p13) target bundleno = 582 (0x246), region = 56  ;;  %p3397_p8 = scmp.eq.s32.totalorder (!%p3030_p13), %s2991_s17, 0 }
  0x65   : > { %2872 = dma.done.wait (%p3397_p8), [#allocation3], 128   ;;  %p3398_p3 = pmov %p3397_p8 }
  0x67   : > { %2874 = vsyncadd (%p3398_p3), [#allocation3], 4294967168  ;;  %p3399_p4 = pmov %p3398_p3 }
  0x68   : > { %p3400_p0 = pmov %p3398_p3 }
  0x69   : > { %2876 = dma.done.wait (%p3399_p4), [#allocation6], 1024  }
  0x6a   : > { %2878 = vsyncadd (%p3400_p0), [#allocation6], 4294966272  ;;  %s415_s20 = sand.u32 1, %s2991_s17   ;;  %s3136_s23 = sand.u32 1, %s2897_s14  }
  0x6b   : > { %s2538_s27 = smul.u32 768, %s3136_s23  ;;  %s416_s19 = scalar_lea.sflag [#allocation3], %s415_s20 }
  0x6d   : > { %s3139_s26 = scalar_lea.vmem [#allocation7], %s2538_s27 }
  0x6e   : > { %2880 = dma.done.wait (%p3015_p6), %s416_s19, 12480  }
  0x6f   : > { %2882 = vsyncadd (%p3015_p6), %s416_s19, 4294954816  ;;  %v2432_v0 = vld [vmem:[%s3356_s1 + $0x8] sm:$0xff]  ;;  %v2440_v1 = vld [vmem:[#allocation5 + $0x38] sm:$0xff]  ;;  %vm515_vm0 = vcmask 261120   ;;  %s1846_s9 = sshll.u32 %s3136_s23, 2  ;;  %s3281_s29 = sshll.u32 %s3136_s23, 3 }
  0x70   : > { %525 = vmatpush.bf16.msra.mxu0 %v2432_v0  ;;  %v2431_v2 = vld [vmem:[%s3356_s1] sm:$0xff]  ;;  %602 = vmatpush.bf16.msra.mxu1 %v2440_v1  ;;  %v2439_v4 = vld [vmem:[#allocation5 + $0x30] sm:$0xff]  ;;  %v2438_v6 = vld [vmem:[#allocation5 + $0x28] sm:$0xff]  ;;  %s3236_s10 = scalar_lea.vmem [#allocation8], %s1846_s9  ;;  %s2427_s11 = sshll.u32 %s2991_s17, 3 }
  0x71   : > { %v493_v3 = vld [vmem:[#allocation2] sm:$0xff]  ;;  %v2437_v7 = vld [vmem:[#allocation5 + $0x20] sm:$0xff]  ;;  %v2435_v9 = vld [vmem:[#allocation5 + $0x10] sm:$0xff]  ;;  %s3403_s27 = sld [smem:[#allocation28_spill]]  ;;  %s491_s5 = scalar_lea.vmem [#allocation11], %s3281_s29 }
  0x72   : > { %v494_v5 = vpack.c.bf16 %v493_v3, %v493_v3  ;;  %v2436_v8 = vld [vmem:[#allocation5 + $0x18] sm:$0xff]  ;;  %v2434_v10 = vld [vmem:[#allocation5 + $0x8] sm:$0xff]  ;;  %v2433_v11 = vld [vmem:[#allocation5] sm:$0xff]  ;;  %s3298_s25 = sshll.u32 %s491_s5, 4  ;;  %s3405_s12 = sld [smem:[#allocation27_spill]]  ;;  %s1671_s25 = int_to_ptr.vmem [resolvable:$true] %s3298_s25 }
  0x73   : > { %v2456_v12 = vld [vmem:[%s3139_s26 + $0x78] sm:$0xff]  ;;  %v2455_v14 = vld [vmem:[%s3139_s26 + $0x70] sm:$0xff]  ;;  %v2454_v18 = vld [vmem:[%s3139_s26 + $0x68] sm:$0xff]  ;;  %s1644_s15 = scalar_lea.sflag [#allocation12], %s3136_s23 }
  0x74   : > { %526 = vmatpush.bf16.msra.mxu0 %v2431_v2  ;;  %603 = vmatpush.bf16.msra.mxu1 %v2439_v4  ;;  %v2464_v13 = vld [vmem:[%s3139_s26 + $0xb8] sm:$0xff]  ;;  %v2463_v15 = vld [vmem:[%s3139_s26 + $0xb0] sm:$0xff]  ;;  %v2462_v20 = vld [vmem:[%s3139_s26 + $0xa8] sm:$0xff] }
  0x75   : > { %835 = vmatpush.bf16.msra.mxu3 %v2456_v12  ;;  %v2448_v16 = vld [vmem:[%s3139_s26 + $0x38] sm:$0xff]  ;;  %v2447_v19 = vld [vmem:[%s3139_s26 + $0x30] sm:$0xff]  ;;  %v2453_v22 = vld [vmem:[%s3139_s26 + $0x60] sm:$0xff] }
  0x76   : > { %v2472_v17 = vld [vmem:[%s3139_s26 + $0xf8] sm:$0xff]  ;;  %822 = vmatpush.bf16.msra.mxu2 %v2448_v16  ;;  %v2471_v21 = vld [vmem:[%s3139_s26 + $0xf0] sm:$0xff]  ;;  %v2446_v23 = vld [vmem:[%s3139_s26 + $0x28] sm:$0xff] }
  0x77   : > { %1858 = vmatmul.msk.bf16.vlgmr.msra.gmra.mxu0 %vm515_vm0, %v494_v5  ;;  %v2461_v24 = vld [vmem:[%s3139_s26 + $0xa0] sm:$0xff]  ;;  %v2470_v25 = vld [vmem:[%s3139_s26 + $0xe8] sm:$0xff]  ;;  %v2452_v26 = vld [vmem:[%s3139_s26 + $0x58] sm:$0xff]  ;;  %s1668_s19 = scalar_lea.hbm %s3403_s27, %s2427_s11  ;;  %s2819_s17 = scalar_lea.hbm %s3403_s27, 16 }
  0x78   : > { %604 = vmatpush.bf16.msra.mxu1 %v2438_v6  ;;  %848 = vmatpush.bf16.msrb.mxu0 %v2464_v13  ;;  %v2445_v27 = vld [vmem:[%s3139_s26 + $0x20] sm:$0xff]  ;;  %v2460_v28 = vld [vmem:[%s3139_s26 + $0x98] sm:$0xff]  ;;  %v2451_v30 = vld [vmem:[%s3139_s26 + $0x50] sm:$0xff]  ;;  %s1672_s30 = sshll.u32 %s1668_s19, 4  ;;  %s3308_s13 = scalar_lea.hbm %s3405_s12, %s2427_s11  ;;  %s1673_s30 = int_to_ptr.hbm [resolvable:$true] %s1672_s30 }
  0x79   : > { %836 = vmatpush.bf16.msra.mxu3 %v2455_v14  ;;  %v2469_v29 = vld [vmem:[%s3139_s26 + $0xe0] sm:$0xff]  ;;  %v2444_v31 = vld [vmem:[%s3139_s26 + $0x18] sm:$0xff]  ;;  %v2459_v32 = vld [vmem:[%s3139_s26 + $0x90] sm:$0xff]  ;;  %s2813_s22 = sshra.s32 %s1673_s30, 4  ;;  %s2814_s22 = int_to_ptr.hbm [resolvable:$true] %s2813_s22 }
  0x7a   : > { %823 = vmatpush.bf16.msra.mxu2 %v2447_v19  ;;  %v2468_v33 = vld [vmem:[%s3139_s26 + $0xd8] sm:$0xff]  ;;  %v2450_v35 = vld [vmem:[%s3139_s26 + $0x48] sm:$0xff]  ;;  %v2443_v36 = vld [vmem:[%s3139_s26 + $0x10] sm:$0xff]  ;;  %s2815_s9 = scalar_lea.hbm %s2814_s22, 8  ;;  %p2820_p5 = scmp.lt.s32.totalorder %s2814_s22, %s3403_s27 }
  0x7b   : > { %v2627_v34 = vld [vmem:[%s3357_s2] ss:$0 sm:$0xff]  ;;  %v2458_v37 = vld [vmem:[%s3139_s26 + $0x88] sm:$0xff]  ;;  %v2467_v38 = vld [vmem:[%s3139_s26 + $0xd0] sm:$0xff]  ;;  %p2816_p6 = scmp.ne.s32.totalorder %s2814_s22, %s2815_s9  ;;  %p2821_p2 = scmp.lt.s32.totalorder %s2819_s17, %s2815_s9 }
  0x7c   : > { %605 = vmatpush.bf16.msra.mxu1 %v2437_v7  ;;  %849 = vmatpush.bf16.msrb.mxu0 %v2463_v15  ;;  %v616_v40 = vld [vmem:[%s3362_s7] sm:$0xff]  ;;  %v617_v41 = vld [vmem:[%s3362_s7 + $0x8] sm:$0xff]  ;;  %v2442_v45 = vld [vmem:[%s3139_s26 + $0x8] sm:$0xff] }
  0x7d   : > { %837 = vmatpush.bf16.msra.mxu3 %v2454_v18  ;;  %v618_v43 = vpack.c.bf16 %v617_v41, %v616_v40  ;;  %v2449_v44 = vld [vmem:[%s3139_s26 + $0x40] sm:$0xff]  ;;  %v2488_v47 = vld [vmem:[%s3139_s26 + $0x178] sm:$0xff]  ;;  %v2466_v50 = vld [vmem:[%s3139_s26 + $0xc8] sm:$0xff]  ;;  %p2817_p13 = pnand %p2816_p6, %p3022_p11  ;;  %p2822_p9 = por %p2821_p2, %p2820_p5 }
  0x7e   : > { %824 = vmatpush.bf16.msra.mxu2 %v2446_v23  ;;  %v2457_v49 = vld [vmem:[%s3139_s26 + $0x80] sm:$0xff]  ;;  %v2496_v52 = vld [vmem:[%s3139_s26 + $0x1b8] sm:$0xff]  ;;  %v2487_v55 = vld [vmem:[%s3139_s26 + $0x170] sm:$0xff] }
  0x7f   : > { %v620_v48 = vunpack.c.l.b16 %v618_v43  ;;  %v2441_v54 = vld [vmem:[%s3139_s26] sm:$0xff]  ;;  %v2480_v56 = vld [vmem:[%s3139_s26 + $0x138] sm:$0xff]  ;;  %v2495_v59 = vld [vmem:[%s3139_s26 + $0x1b0] sm:$0xff]  ;;  %v621_v3 = vunpack.c.h.b16 %v618_v43  ;;  %p2818_p7 = pneg %p2817_p13 }
  0x80   : > { %606 = vmatpush.bf16.msra.mxu1 %v2436_v8  ;;  %850 = vmatpush.bf16.msrb.mxu0 %v2462_v20  ;;  %v2465_v58 = vld [vmem:[%s3139_s26 + $0xc0] sm:$0xff]  ;;  %v2504_v60 = vld [vmem:[%s3139_s26 + $0x1f8] sm:$0xff]  ;;  %v2486_v61 = vld [vmem:[%s3139_s26 + $0x168] sm:$0xff] }
  0x81   : > { %838 = vmatpush.bf16.msra.mxu3 %v2453_v22  ;;  %v3192_v53 = vpack.c.b16 %v620_v48, %v620_v48  ;;  %v2479_v62 = vld [vmem:[%s3139_s26 + $0x130] sm:$0xff]  ;;  %v2494_v63 = vld [vmem:[%s3139_s26 + $0x1a8] sm:$0xff]  ;;  %v2485_v1 = vld [vmem:[%s3139_s26 + $0x160] sm:$0xff]  ;;  %v3209_v6 = vpack.c.b16 %v621_v3, %v621_v3  ;;  %p2823_p10 = pnand %p2822_p9, %p2818_p7 }
  0x82   : > { %825 = vmatpush.bf16.msra.mxu2 %v2445_v27  ;;  %v2503_v0 = vld [vmem:[%s3139_s26 + $0x1f0] sm:$0xff]  ;;  %v2478_v2 = vld [vmem:[%s3139_s26 + $0x128] sm:$0xff]  ;;  %v2493_v4 = vld [vmem:[%s3139_s26 + $0x1a0] sm:$0xff] }
  0x83   : > { %v2502_v5 = vld [vmem:[%s3139_s26 + $0x1e8] sm:$0xff]  ;;  %v2484_v7 = vld [vmem:[%s3139_s26 + $0x158] sm:$0xff]  ;;  %v2477_v8 = vld [vmem:[%s3139_s26 + $0x120] sm:$0xff] }
  0x84   : > { %607 = vmatpush.bf16.msra.mxu1 %v2435_v9  ;;  %851 = vmatpush.bf16.msrb.mxu0 %v2461_v24  ;;  %v2492_v9 = vld [vmem:[%s3139_s26 + $0x198] sm:$0xff]  ;;  %v2491_v13 = vld [vmem:[%s3139_s26 + $0x190] sm:$0xff]  ;;  %v2482_v15 = vld [vmem:[%s3139_s26 + $0x148] sm:$0xff] }
  0x85   : > { %839 = vmatpush.bf16.msra.mxu3 %v2452_v26  ;;  %v2476_v12 = vld [vmem:[%s3139_s26 + $0x118] sm:$0xff]  ;;  %v2475_v16 = vld [vmem:[%s3139_s26 + $0x110] sm:$0xff]  ;;  %v2481_v19 = vld [vmem:[%s3139_s26 + $0x140] sm:$0xff] }
  0x86   : > { %826 = vmatpush.bf16.msra.mxu2 %v2444_v31  ;;  %v2500_v14 = vld [vmem:[%s3139_s26 + $0x1d8] sm:$0xff]  ;;  %v2499_v18 = vld [vmem:[%s3139_s26 + $0x1d0] sm:$0xff]  ;;  %v2526_v26 = vld [vmem:[%s3139_s26 + $0x2a8] sm:$0xff] }
  0x87   : > { %v2520_v20 = vld [vmem:[%s3139_s26 + $0x278] sm:$0xff]  ;;  %v2519_v23 = vld [vmem:[%s3139_s26 + $0x270] sm:$0xff]  ;;  %v2517_v27 = vld [vmem:[%s3139_s26 + $0x260] sm:$0xff] }
  0x88   : > { %608 = vmatpush.bf16.msra.mxu1 %v2434_v10  ;;  %852 = vmatpush.bf16.msrb.mxu0 %v2460_v28  ;;  %v2501_v10 = vld [vmem:[%s3139_s26 + $0x1e0] sm:$0xff]  ;;  %v2528_v22 = vld [vmem:[%s3139_s26 + $0x2b8] sm:$0xff]  ;;  %v2527_v24 = vld [vmem:[%s3139_s26 + $0x2b0] sm:$0xff] }
  0x89   : > { %840 = vmatpush.bf16.msra.mxu3 %v2451_v30  ;;  %v2516_v28 = vld [vmem:[%s3139_s26 + $0x258] sm:$0xff]  ;;  %v2514_v30 = vld [vmem:[%s3139_s26 + $0x248] sm:$0xff]  ;;  %v2521_v40 = vld [vmem:[%s3139_s26 + $0x280] sm:$0xff] }
  0x8a   : > { %827 = vmatpush.bf16.msra.mxu2 %v2443_v36  ;;  %v2474_v31 = vld [vmem:[%s3139_s26 + $0x108] sm:$0xff]  ;;  %v2497_v36 = vld [vmem:[%s3139_s26 + $0x1c0] sm:$0xff]  ;;  %v2628_v41 = vld [vmem:[%s3359_s4] ss:$0 sm:$0xff] }
  0x8b   : > { %v2535_v48 = vld [vmem:[%s3139_s26 + $0x2f0] sm:$0xff] }
  0x8c   : > { %609 = vmatpush.bf16.msra.mxu1 %v2433_v11  ;;  %853 = vmatpush.bf16.msrb.mxu0 %v2459_v32  ;;  %v2483_v11 = vld [vmem:[%s3139_s26 + $0x150] sm:$0xff]  ;;  %v2498_v32 = vld [vmem:[%s3139_s26 + $0x1c8] sm:$0xff] }
  0x8d   : > { %841 = vmatpush.bf16.msra.mxu3 %v2450_v35  ;;  %v2473_v35 = vld [vmem:[%s3139_s26 + $0x100] sm:$0xff] }
  0x8e   : > { %828 = vmatpush.bf16.msra.mxu2 %v2442_v45  ;;  %v2512_v45 = vld [vmem:[%s3139_s26 + $0x238] sm:$0xff] }
  0x90   : > { %1078 = vmatpush.bf16.msrb.mxu1 %v2472_v17  ;;  %854 = vmatpush.bf16.msrb.mxu0 %v2458_v37  ;;  %v2490_v17 = vld [vmem:[%s3139_s26 + $0x188] sm:$0xff]  ;;  %v2524_v37 = vld [vmem:[%s3139_s26 + $0x298] sm:$0xff] }
  0x91   : > { %842 = vmatpush.bf16.msra.mxu3 %v2449_v44 }
  0x92   : > { %829 = vmatpush.bf16.msra.mxu2 %v2441_v54 }
  0x94   : > { %1079 = vmatpush.bf16.msrb.mxu1 %v2471_v21  ;;  %855 = vmatpush.bf16.msrb.mxu0 %v2457_v49  ;;  %v2489_v21 = vld [vmem:[%s3139_s26 + $0x180] sm:$0xff] }
  0x95   : > { %1104 = vmatpush.bf16.msrb.mxu3 %v2488_v47  ;;  %v2511_v47 = vld [vmem:[%s3139_s26 + $0x230] sm:$0xff] }
  0x96   : > { %843 = vmatmul.bf16.vlgmr.msra.gmra.mxu3 %v3192_v53  ;;  %1091 = vmatpush.bf16.msrb.mxu2 %v2480_v56  ;;  %v2533_v56 = vld [vmem:[%s3139_s26 + $0x2e0] sm:$0xff] }
  0x97   : > { %856 = vmatmul.bf16.vlgmr.msrb.gmra.mxu0 %v3209_v6 }
  0x98   : > { %1080 = vmatpush.bf16.msrb.mxu1 %v2470_v25  ;;  %1334 = vmatpush.bf16.msra.mxu0 %v2496_v52  ;;  %v2518_v25 = vld [vmem:[%s3139_s26 + $0x268] sm:$0xff] }
  0x99   : > { %1105 = vmatpush.bf16.msrb.mxu3 %v2487_v55  ;;  %v2534_v52 = vld [vmem:[%s3139_s26 + $0x2e8] sm:$0xff]  ;;  %v2509_v55 = vld [vmem:[%s3139_s26 + $0x220] sm:$0xff] }
  0x9a   : > { %1092 = vmatpush.bf16.msrb.mxu2 %v2479_v62  ;;  %v2531_v62 = vld [vmem:[%s3139_s26 + $0x2d0] sm:$0xff] }
  0x9c   : > { %1081 = vmatpush.bf16.msrb.mxu1 %v2469_v29  ;;  %1335 = vmatpush.bf16.msra.mxu0 %v2495_v59  ;;  %v2515_v29 = vld [vmem:[%s3139_s26 + $0x250] sm:$0xff]  ;;  %v2532_v59 = vld [vmem:[%s3139_s26 + $0x2d8] sm:$0xff] }
  0x9d   : > { %1106 = vmatpush.bf16.msrb.mxu3 %v2486_v61  ;;  %v2507_v61 = vld [vmem:[%s3139_s26 + $0x210] sm:$0xff] }
  0x9e   : > { %1093 = vmatpush.bf16.msrb.mxu2 %v2478_v2  ;;  %v2529_v2 = vld [vmem:[%s3139_s26 + $0x2c0] sm:$0xff] }
  0xa0   : > { %1082 = vmatpush.bf16.msrb.mxu1 %v2468_v33  ;;  %1336 = vmatpush.bf16.msra.mxu0 %v2494_v63  ;;  %v2513_v33 = vld [vmem:[%s3139_s26 + $0x240] sm:$0xff]  ;;  %v2506_v63 = vld [vmem:[%s3139_s26 + $0x208] sm:$0xff] }
  0xa1   : > { %1107 = vmatpush.bf16.msrb.mxu3 %v2485_v1  ;;  %v2505_v1 = vld [vmem:[%s3139_s26 + $0x200] sm:$0xff] }
  0xa2   : > { %1094 = vmatpush.bf16.msrb.mxu2 %v2477_v8 }
  0xa4   : > { %1083 = vmatpush.bf16.msrb.mxu1 %v2467_v38  ;;  %1337 = vmatpush.bf16.msra.mxu0 %v2493_v4  ;;  %v2523_v38 = vld [vmem:[%s3139_s26 + $0x290] sm:$0xff] }
  0xa5   : > { %1108 = vmatpush.bf16.msrb.mxu3 %v2484_v7  ;;  %v2631_v7 = vld [vmem:[%s3236_s10] ss:$0 sm:$0xff] }
  0xa6   : > { %1095 = vmatpush.bf16.msrb.mxu2 %v2476_v12 }
  0xa8   : > { %1084 = vmatpush.bf16.msrb.mxu1 %v2466_v50  ;;  %1338 = vmatpush.bf16.msra.mxu0 %v2492_v9 }
  0xa9   : > { %1109 = vmatpush.bf16.msrb.mxu3 %v2483_v11 }
  0xaa   : > { %1096 = vmatpush.bf16.msrb.mxu2 %v2475_v16 }
  0xac   : > { %1085 = vmatpush.bf16.msrb.mxu1 %v2465_v58  ;;  %1339 = vmatpush.bf16.msra.mxu0 %v2491_v13  ;;  %v2508_v58 = vld [vmem:[%s3139_s26 + $0x218] sm:$0xff] }
  0xad   : > { %1110 = vmatpush.bf16.msrb.mxu3 %v2482_v15 }
  0xae   : > { %1097 = vmatpush.bf16.msrb.mxu2 %v2474_v31 }
  0xb0   : > { %1340 = vmatpush.bf16.msra.mxu0 %v2490_v17 }
  0xb1   : > { %1111 = vmatpush.bf16.msrb.mxu3 %v2481_v19  ;;  %v2629_v19 = vld [vmem:[%s3236_s10 + $0x1] ss:$0 sm:$0xff] }
  0xb2   : > { %1098 = vmatpush.bf16.msrb.mxu2 %v2473_v35  ;;  %v2630_v35 = vld [vmem:[%s3236_s10 + $0x2] ss:$0 sm:$0xff] }
  0xb4   : > { %1341 = vmatpush.bf16.msra.mxu0 %v2489_v21  ;;  %1112 = vmatmul.bf16.vlgmr.msrb.gmra.mxu3 %v3209_v6 }
  0xb5   : > { %1572 = vmatpush.bf16.msra.mxu3 %v2520_v20 }
  0xb8   : > { %1585 = vmatpush.bf16.msrb.mxu0 %v2528_v22 }
  0xb9   : > { %1573 = vmatpush.bf16.msra.mxu3 %v2519_v23 }
  0xbc   : > { %1586 = vmatpush.bf16.msrb.mxu0 %v2527_v24 }
  0xbd   : > { %1574 = vmatpush.bf16.msra.mxu3 %v2518_v25 }
  0xc0   : > { %1587 = vmatpush.bf16.msrb.mxu0 %v2526_v26 }
  0xc1   : > { %1575 = vmatpush.bf16.msra.mxu3 %v2517_v27 }
  0xc5   : > { %1576 = vmatpush.bf16.msra.mxu3 %v2516_v28  ;;  %v2632_v28 = vld [vmem:[%s3236_s10 + $0x3] ss:$0 sm:$0xff] }
  0xc9   : > { %1577 = vmatpush.bf16.msra.mxu3 %v2515_v29 }
  0xcd   : > { %1578 = vmatpush.bf16.msra.mxu3 %v2514_v30 }
  0xd1   : > { %1579 = vmatpush.bf16.msra.mxu3 %v2513_v33 }
  0xf4   : > { %v528_v39 = vpop.f32.mrf.mxu0 }
  0xf5   : > { %v529_v42 = vadd.f32 %v2627_v34, %v528_v39  ;;  %v2525_v34 = vld [vmem:[%s3139_s26 + $0x2a0] sm:$0xff]  ;;  %v2522_v39 = vld [vmem:[%s3139_s26 + $0x288] sm:$0xff] }
  0xf6   : > { %1588 = vmatpush.bf16.msrb.mxu0 %v2525_v34 }
  0xf7   : > { %v532_v46 = vmax.f32 %v529_v42, 0.0 }
  0xf9   : > { %v533_v51 = vpack.c.bf16 %v532_v46, %v532_v46  ;;  %v2536_v46 = vld [vmem:[%s3139_s26 + $0x2f8] sm:$0xff] }
  0xfa   : > { %1589 = vmatpush.bf16.msrb.mxu0 %v2524_v37 }
  0xfb   : > { %610 = vmatmul.bf16.vlgmr.msra.gmra.mxu1 %v533_v51  ;;  %v2510_v51 = vld [vmem:[%s3139_s26 + $0x228] sm:$0xff] }
  0xfc   : > { %v530_v57 = vpop.f32.mrf.mxu0  ;;  %1347 = vmatpush.bf16.msra.mxu1 %v2504_v60 }
  0xfe   : > { %1590 = vmatpush.bf16.msrb.mxu0 %v2523_v38 }
 0x100   : > { %1348 = vmatpush.bf16.msra.mxu1 %v2503_v0  ;;  %v2530_v0 = vld [vmem:[%s3139_s26 + $0x2c8] sm:$0xff]  ;;  %s439_s26 = scalar_lea.vmem [#allocation9], %s3281_s29 }
 0x102   : > { %1591 = vmatpush.bf16.msrb.mxu0 %v2522_v39 }
 0x104   : > { %1349 = vmatpush.bf16.msra.mxu1 %v2502_v5 }
 0x106   : > { %1592 = vmatpush.bf16.msrb.mxu0 %v2521_v40 }
 0x108   : > { %1350 = vmatpush.bf16.msra.mxu1 %v2501_v10 }
 0x10c   : > { %1351 = vmatpush.bf16.msra.mxu1 %v2500_v14 }
 0x110   : > { %1352 = vmatpush.bf16.msra.mxu1 %v2499_v18 }
 0x114   : > { %1353 = vmatpush.bf16.msra.mxu1 %v2498_v32  ;;  %v857_v54 = vpop.f32.mrf.mxu0 }
 0x118   : > { %1354 = vmatpush.bf16.msra.mxu1 %v2497_v36 }
 0x119   : > { %v844_v50 = vpop.f32.mrf.mxu3 }
 0x11c   : > { %v859_v60 = vpop.f32.mrf.mxu0 }
 0x121   : > { %v846_v57 = vpop.f32.mrf.mxu3 }
 0x137   : > { %v1113_v3 = vpop.f32.mrf.mxu3 }
 0x178   : > { %v611_v42 = vpop.f32.mrf.mxu1 }
 0x179   : > { %v612_v43 = vadd.f32 %v2628_v41, %v611_v42 }
 0x17b   : > { %v615_v44 = vpack.c.bf16 %v612_v43, %v612_v43 }
 0x17d   : > { %830 = vmatmul.bf16.vlgmr.msra.gmra.mxu2 %v615_v44  ;;  %1086 = vmatmul.bf16.vlgmr.msrb.gmra.mxu1 %v615_v44 }
 0x17e   : > { %1342 = vmatmul.bf16.vlgmr.msra.gmra.mxu0 %v615_v44  ;;  %1580 = vmatmul.bf16.vlgmr.msra.gmra.mxu3 %v615_v44 }
 0x17f   : > { %1360 = vmatpush.bf16.msra.mxu2 %v2512_v45  ;;  %1598 = vmatpush.bf16.msrb.mxu1 %v2536_v46 }
 0x180   : > { %v613_v49 = vpop.f32.mrf.mxu1 }
 0x183   : > { %1361 = vmatpush.bf16.msra.mxu2 %v2511_v47  ;;  %1599 = vmatpush.bf16.msrb.mxu1 %v2535_v48 }
 0x187   : > { %1362 = vmatpush.bf16.msra.mxu2 %v2510_v51  ;;  %1600 = vmatpush.bf16.msrb.mxu1 %v2534_v52 }
 0x18b   : > { %1363 = vmatpush.bf16.msra.mxu2 %v2509_v55  ;;  %1601 = vmatpush.bf16.msrb.mxu1 %v2533_v56 }
 0x18d   : > { %1099 = vmatmul.bf16.vlgmr.msrb.gmra.mxu2 %v3192_v53  ;;  %1355 = vmatmul.bf16.vlgmr.msra.gmra.mxu1 %v3192_v53 }
 0x18e   : > { %1593 = vmatmul.bf16.vlgmr.msrb.gmra.mxu0 %v3192_v53  ;;  %v1115_v53 = vpop.f32.mrf.mxu3 }
 0x18f   : > { %1364 = vmatpush.bf16.msra.mxu2 %v2508_v58  ;;  %1602 = vmatpush.bf16.msrb.mxu1 %v2532_v59 }
 0x193   : > { %1365 = vmatpush.bf16.msra.mxu2 %v2507_v61  ;;  %1603 = vmatpush.bf16.msrb.mxu1 %v2531_v62 }
 0x197   : > { %1366 = vmatpush.bf16.msra.mxu2 %v2506_v63  ;;  %1604 = vmatpush.bf16.msrb.mxu1 %v2530_v0 }
 0x19b   : > { %1367 = vmatpush.bf16.msra.mxu2 %v2505_v1  ;;  %1605 = vmatpush.bf16.msrb.mxu1 %v2529_v2 }
 0x19e   : > { %1368 = vmatmul.bf16.vlgmr.msra.gmra.mxu2 %v3209_v6  ;;  %1606 = vmatmul.bf16.vlgmr.msrb.gmra.mxu1 %v3209_v6 }
 0x1fa   : > { %v1087_v4 = vpop.f32.mrf.mxu1 }
 0x1fb   : > { %v1343_v5 = vpop.f32.mrf.mxu0  ;;  %v1088_v21 = vadd.f32 %v2629_v19, %v1087_v4 }
 0x1fc   : > { %v1344_v41 = vadd.f32 %v2630_v35, %v1343_v5 }
 0x200   : > { %v831_v8 = vpop.f32.mrf.mxu2 }
 0x201   : > { %v832_v9 = vadd.f32 %v2631_v7, %v831_v8  ;;  %v1581_v10 = vpop.f32.mrf.mxu3 }
 0x202   : > { %v1089_v11 = vpop.f32.mrf.mxu1  ;;  %v1582_v30 = vadd.f32 %v2632_v28, %v1581_v10 }
 0x203   : > { %v845_v12 = vadd.f32 %v844_v50, %v832_v9  ;;  %v1345_v13 = vpop.f32.mrf.mxu0 }
 0x205   : > { %v858_v14 = vadd.f32 %v857_v54, %v845_v12 }
 0x207   : > { %v1987_v15 = vmul.f32 -1.442695, %v858_v14 }
 0x208   : > { %v833_v16 = vpop.f32.mrf.mxu2 }
 0x209   : > { %2633 = vpow2.f32 %v1987_v15  ;;  %v1583_v17 = vpop.f32.mrf.mxu3 }
 0x20a   : > { %v1356_v18 = vpop.f32.mrf.mxu1 }
 0x20b   : > { %v1594_v6 = vpop.f32.mrf.mxu0  ;;  %v1357_v44 = vadd.f32 %v1356_v18, %v1344_v41 }
 0x20c   : > { %v1595_v33 = vadd.f32 %v1594_v6, %v1582_v30 }
 0x20f   : > { %v2634_v20 = vpop.eup %2633 }
 0x210   : > { %v864_v22 = vadd.f32 1.0, %v2634_v20  ;;  %v1100_v23 = vpop.f32.mrf.mxu2 }
 0x211   : > { %v1101_v24 = vadd.f32 %v1100_v23, %v1088_v21 }
 0x212   : > { %v1358_v25 = vpop.f32.mrf.mxu1  ;;  %2635 = vrcp.f32 %v864_v22  ;;  %vm870_vm2 = vweird.f32 %v864_v22  ;;  %v876_v57 = vand.u32 2147483648, %v864_v22  ;;  %v874_v59 = vand.u32 2147483647, %v864_v22 }
 0x213   : > { %v1114_v26 = vadd.f32 %v1113_v3, %v1101_v24  ;;  %v1596_v27 = vpop.f32.mrf.mxu0  ;;  %v1630_v3 = vld [vmem:[%s439_s26] sm:$0xff] }
 0x214   : > { %v877_v2 = vor.u32 1.1754944e-38, %v876_v57  ;;  %vm875_vm7 = vcmp.eq.f32.partialorder %v874_v59, 8.507059e+37 }
 0x215   : > { %v2133_v29 = vmul.f32 -1.442695, %v1114_v26 }
 0x217   : > { %2637 = vpow2.f32 %v2133_v29 }
 0x218   : > { %v1102_v31 = vpop.f32.mrf.mxu2  ;;  %v2636_v32 = vpop.eup %2635 }
 0x219   : > { %v866_v38 = vmul.f32 %v2636_v32, %v864_v22  ;;  %vm871_vm1 = vweird.f32 %v2636_v32 }
 0x21a   : > { %vm3285_vm4 = vmor %vm870_vm2, %vm871_vm1 }
 0x21b   : > { %v1607_v34 = vpop.f32.mrf.mxu1  ;;  %v867_v42 = vsub.f32 1.0, %v866_v38 }
 0x21c   : > { %v1608_v36 = vadd.f32 %v1607_v34, %v1595_v33 }
 0x21d   : > { %v2638_v37 = vpop.eup %2637  ;;  %v868_v47 = vmul.f32 %v2636_v32, %v867_v42 }
 0x21e   : > { %v1120_v39 = vadd.f32 1.0, %v2638_v37  ;;  %v2424_v40 = vmul.f32 -1.442695, %v1608_v36 }
 0x21f   : > { %v869_v54 = vadd.f32 %v2636_v32, %v868_v47 }
 0x220   : > { %2639 = vrcp.f32 %v1120_v39  ;;  %v1132_v56 = vand.u32 2147483648, %v1120_v39  ;;  %v1130_v60 = vand.u32 2147483647, %v1120_v39  ;;  %vm1126_vm5 = vweird.f32 %v1120_v39 }
 0x221   : > { %2641 = vpow2.f32 %v2424_v40  ;;  %v1369_v43 = vpop.f32.mrf.mxu2  ;;  %v873_v62 = vsel %vm3285_vm4, %v2636_v32, %v869_v54 }
 0x222   : > { %v1370_v46 = vadd.f32 %v1369_v43, %v1357_v44  ;;  %v1133_v1 = vor.u32 1.1754944e-38, %v1132_v56  ;;  %vm1131_vm8 = vcmp.eq.f32.partialorder %v1130_v60, 8.507059e+37  ;;  %v878_v5 = vsel %vm875_vm7, %v877_v2, %v873_v62 }
 0x223   : > { %v1609_v45 = vpop.f32.mrf.mxu1 }
 0x224   : > { %2643 = vtanh.f32 %v1370_v46 }
 0x226   : > { %v2640_v48 = vpop.eup %2639 }
 0x227   : > { %v2642_v49 = vpop.eup %2641  ;;  %v1122_v50 = vmul.f32 %v2640_v48, %v1120_v39  ;;  %vm1127_vm3 = vweird.f32 %v2640_v48 }
 0x228   : > { %v3278_v51 = vadd.f32 1.0, %v2642_v49  ;;  %vm1128_vm6 = vmor %vm1126_vm5, %vm1127_vm3 }
 0x229   : > { %v1123_v52 = vsub.f32 1.0, %v1122_v50  ;;  %v1371_v55 = vpop.f32.mrf.mxu2 }
 0x22a   : > { %2645 = vrcp.f32 %v3278_v51  ;;  %v2644_v0 = vpop.eup %2643  ;;  %v1626_v14 = vand.u32 2147483648, %v3278_v51  ;;  %v1624_v15 = vand.u32 2147483647, %v3278_v51 }
 0x22b   : > { %v1124_v58 = vmul.f32 %v2640_v48, %v1123_v52  ;;  %v1632_v9 = vmul.f32 %v2644_v0, %v878_v5 }
 0x22d   : > { %v1125_v63 = vadd.f32 %v2640_v48, %v1124_v58 }
 0x22f   : > { %v1129_v53 = vsel %vm1128_vm6, %v2640_v48, %v1125_v63 }
 0x230   : > { %v2646_v4 = vpop.eup %2645  ;;  %v1134_v7 = vsel %vm1131_vm8, %v1133_v1, %v1129_v53 }
 0x231   : > { %v1616_v8 = vmul.f32 %v2646_v4, %v3278_v51  ;;  %v1631_v10 = vmul.f32 %v1630_v3, %v1134_v7  ;;  %vm1621_vm9 = vweird.f32 %v2646_v4 }
 0x233   : > { %v1617_v11 = vsub.f32 1.0, %v1616_v8  ;;  %v1633_v12 = vadd.f32 %v1632_v9, %v1631_v10 }
 0x235   : > { %v1618_v13 = vmul.f32 %v2646_v4, %v1617_v11  ;;  %2647 = vtanh.f32 %v1633_v12  ;;  %1637 = vst [vmem:[%s491_s5] sm:$0xff] %v1633_v12 }
 0x236   : > { %2826 = shalt.err (!%p2823_p10)
}
 0x237   : > { %2554 = dma.vmem_to_hbm [thread:$0]  (%p3022_p11), %s1671_s25, 128, %s1673_s30, %s1644_s15   ;;  %vm1620_vm10 = vweird.f32 %v3278_v51  ;;  %v1619_v16 = vadd.f32 %v2646_v4, %v1618_v13  ;;  %v1627_v18 = vor.u32 1.1754944e-38, %v1626_v14  ;;  %vm1625_vm12 = vcmp.eq.f32.partialorder %v1624_v15, 8.507059e+37 }
 0x238   : > { %vm1622_vm11 = vmor %vm1620_vm10, %vm1621_vm9  ;;  %s484_s11 = scalar_lea.vmem [#allocation10], %s3281_s29  ;;  %s1658_s19 = sshll.u32 %s3308_s13, 4  ;;  %s1659_s19 = int_to_ptr.hbm [resolvable:$true] %s1658_s19 }
 0x239   : > { %v1623_v17 = vsel %vm1622_vm11, %v2646_v4, %v1619_v16  ;;  %s1656_s20 = sshll.u32 %s484_s11, 4  ;;  %s1639_s26 = scalar_lea.sflag [#allocation4], %s3136_s23  ;;  %s1657_s20 = int_to_ptr.vmem [resolvable:$true] %s1656_s20 }
 0x23a   : > { %v1628_v6 = vsel %vm1625_vm12, %v1627_v18, %v1623_v17  ;;  %s2841_s5 = sshra.s32 %s1659_s19, 4  ;;  %s2847_s29 = scalar_lea.hbm %s3405_s12, 16  ;;  %s2842_s5 = int_to_ptr.hbm [resolvable:$true] %s2841_s5 }
 0x23b   : > { %v2648_v19 = vpop.eup %2647  ;;  %s2843_s25 = scalar_lea.hbm %s2842_s5, 8  ;;  %p2848_p4 = scmp.lt.s32.totalorder %s2842_s5, %s3405_s12 }
 0x23c   : > { %v1635_v20 = vmul.f32 %v2648_v19, %v1628_v6  ;;  %p2844_p1 = scmp.ne.s32.totalorder %s2842_s5, %s2843_s25  ;;  %p2849_p0 = scmp.lt.s32.totalorder %s2847_s29, %s2843_s25 }
 0x23e   : > { %1636 = vst [vmem:[%s484_s11] sm:$0xff] %v1635_v20  ;;  %p2845_p8 = pnand %p2844_p1, %p3022_p11  ;;  %p2850_p6 = por %p2849_p0, %p2848_p4 }
 0x240   : > { %p2846_p3 = pneg %p2845_p8 }
 0x242   : > { %p2851_p13 = pnand %p2850_p6, %p2846_p3 }
 0x244   : > { %2854 = shalt.err (!%p2851_p13)
}
 0x245   : > { %2553 = dma.vmem_to_hbm [thread:$0]  (%p3022_p11), %s1657_s20, 128, %s1659_s19, %s1639_s26  }
 0x246 PF: > { %s3406_s23 = sld [smem:[#allocation18_spill]]  ;;  %p3408_p7 = scmp.ge.s32.totalorder %s2905_s16, 2 }
 0x248   : > { %p2575_p5 = pnand %p3408_p7, %p3026_p12 }
 0x24a   : > { %p2576_p2 = pneg %p2575_p5 }
 0x24c   : > { %s1684_s22 = sand.u32 1, %s3406_s23  }
 0x24d   : > { %s1685_s9 = scalar_lea.sflag [#allocation4], %s1684_s22 }
 0x24e   : > { %2884 = dma.done.wait (%p2576_p2), %s1685_s9, 128  }
 0x24f   : > { %2886 = vsyncadd (%p2576_p2), %s1685_s9, 4294967168  ;;  %s1695_s10 = scalar_lea.sflag [#allocation12], %s1684_s22 }
 0x250   : > { %2888 = dma.done.wait (%p2576_p2), %s1695_s10, 128  }
 0x251   : > { %2890 = vsyncadd (%p2576_p2), %s1695_s10, 4294967168  ;;  %s3409_s16 = sld [smem:[#allocation20_spill]]  ;;  %s3412_s13 = smov %s2897_s14 }
 0x252   : > { %s3410_s18 = sld [smem:[#allocation19_spill]] }
 0x253   : > { %s3411_s15 = sld [smem:[#allocation21_spill]] }
 0x257   : > { %p26_p11 = scmp.ge.s32.totalorder %s3409_s16, 4  }
 0x258   : > { %s3413_s14 = smov %s3410_s18 }
 0x259   :  { %28 = sbr.rel (!%p26_p11) target bundleno = 13 (0xd), region = 153 }
 0x25e   :  { %1701 = vsyncpa [#allocation3], 1 }
 0x25f   :  { %1703 = vsyncpa [#allocation3 + $0x1], 1 }
 0x260   :  { %1704 = vsyncpa [#allocation6], 1 }
 0x261   :  { %1705 = vsyncpa [#allocation4], 1 }
 0x262   :  { %1707 = vsyncpa [#allocation4 + $0x1], 1 }
 0x263   :  { %1708 = vsyncpa [#allocation12], 1 }
 0x264   :  { %1710 = vsyncpa [#allocation12 + $0x1], 1 }

</bundles_post_ra>
